<compile_context>
chip_gen: v7x
topology: tpu7x:2x2x1
jax: 0.10.0
libtpu: 0.0.40
codegen_flags: <defaults>
</compile_context>

<pallas_src>
import jax
import jax.numpy as jnp
import numpy as np
from jax import lax
from jax.experimental import pallas as pl
from jax.experimental.pallas import tpu as pltpu

KSIZE = 9
PAD = KSIZE // 2
NEG_SLOPE = 0.2
BN_EPS = 1e-5

# MXU operand dtype for the conv weights / shifted activation views.
CONV_DTYPE = jnp.float32


def _upsample_block_kernel(x_ref, w1_ref, b1_ref, w2_ref, b2_ref,
                           gamma_ref, beta_ref, mask_ref, out_ref,
                           xg_sc, act_sc):
    # x_ref   : (N, Cin, L)        original (not yet upsampled) input, NCL
    # w1_ref  : (K, Cout, Cin)     conv1 weight, one (Cout, Cin) tap per k
    # b1_ref  : (Cout, 1)
    # w2_ref  : (K, Cout, Cout)    conv2 weight
    # b2_ref  : (Cout, 1)
    # gamma_ref, beta_ref : (Cout, 1)  shared BatchNorm1d affine params
    # mask_ref: (1, Lo)            1.0 at real output columns, 0.0 at gaps
    # out_ref : (N, Cout, L2)      final output, NCL
    # xg_sc   : (Cin,  N*Lpi)      zero-gapped, padded, channel-major input
    # act_sc  : (Cout, N*Lpi)      conv1 activations staged as conv2 input
    N, Cin, L = x_ref.shape
    Cout = out_ref.shape[1]
    K = KSIZE
    pad = PAD
    L2 = 2 * L
    Ltot = xg_sc.shape[1]
    Lpi = Ltot // N              # per-item lane stride (multiple of 128)
    Lo = Ltot - 2 * pad          # conv output columns (valid + gaps)
    n_valid = N * L2             # number of real (unmasked) columns

    mask = mask_ref[...]         # (1, Lo)

    # In-kernel nearest-neighbour 2x upsample operand: U[j, 2j] = U[j, 2j+1] = 1.
    row = lax.broadcasted_iota(jnp.int32, (L, L2), 0)
    col = lax.broadcasted_iota(jnp.int32, (L, L2), 1)
    d = col - 2 * row
    up_mat = jnp.logical_and(d >= 0, d <= 1).astype(jnp.float32)     # (L, L2)

    # ---- pack x (upsampled on the fly) into the zero-gapped channel-major
    # buffer; only halo / inter-item gap columns are explicitly zeroed.
    xg_sc[:, 0:pad] = jnp.zeros((Cin, pad), xg_sc.dtype)
    for n in range(N):
        base = n * Lpi + pad
        xg_sc[:, base:base + L2] = jnp.dot(
            x_ref[n], up_mat, preferred_element_type=jnp.float32)
        gap_end = min((n + 1) * Lpi + pad, Ltot)
        xg_sc[:, base + L2:gap_end] = jnp.zeros(
            (Cin, gap_end - base - L2), xg_sc.dtype)

    def conv_bn_lrelu(src_sc, w_ref, b_ref, mask_output):
        # Conv1d as K accumulated MXU matmuls over lane-shifted views
        # (no im2col scratch, no duplicated stores).
        y = jnp.dot(w_ref[0], src_sc[:, 0:Lo].astype(w_ref.dtype),
                    preferred_element_type=jnp.float32)
        for k in range(1, K):
            y = y + jnp.dot(w_ref[k], src_sc[:, k:k + Lo].astype(w_ref.dtype),
                            preferred_element_type=jnp.float32)
        y = y + b_ref[...]                                   # (Cout, Lo)

        # BatchNorm1d (training-mode, biased var) folded to scale/shift.
        # Single masked pass: sum and sum-of-squares (gap columns excluded).
        ym = y * mask
        inv_n = 1.0 / n_valid
        s1 = jnp.sum(ym, axis=1, keepdims=True)              # (Cout, 1)
        s2 = jnp.sum(ym * y, axis=1, keepdims=True)          # sum(y^2 * mask)
        mean = s1 * inv_n
        var = jnp.maximum(s2 * inv_n - mean * mean, 0.0)
        scale = gamma_ref[...] * lax.rsqrt(var + BN_EPS)
        shift = beta_ref[...] - mean * scale
        z = ym * scale + shift
        z = jnp.where(z > 0, z, NEG_SLOPE * z)               # LeakyReLU(0.2)
        if mask_output:
            z = z * mask                                     # re-zero the gaps
        return z

    a1 = conv_bn_lrelu(xg_sc, w1_ref, b1_ref, True)          # (Cout, Lo)

    # Stage conv1 activations as conv2's padded input: only the 2*pad outer
    # halo columns need zeroing (inner gaps are already zero via the mask).
    act_sc[:, 0:pad] = jnp.zeros((Cout, pad), act_sc.dtype)
    act_sc[:, pad + Lo:Ltot] = jnp.zeros((Cout, pad), act_sc.dtype)
    act_sc[:, pad:pad + Lo] = a1

    z2 = conv_bn_lrelu(act_sc, w2_ref, b2_ref, False)        # (Cout, Lo)

    # Scatter the real (lane-aligned) columns back out in NCL layout.
    for n in range(N):
        out_ref[n, :, :] = z2[:, n * Lpi:n * Lpi + L2]


@jax.jit
def upsample_block(x, w1, b1, w2, b2, gamma, beta):
    """x: (N, Cin, L) float32 (PyTorch NCL). Returns (N, Cout, 2*L)."""
    N, Cin, L = x.shape
    Cout = w1.shape[0]
    K = KSIZE
    L2 = 2 * L

    # Per-item lane stride rounded up to a multiple of 128 so per-item slices
    # start lane-aligned; the extra columns stay zero and are masked out.
    Lpi = -(-(L2 + 2 * PAD) // 128) * 128
    Ltot = N * Lpi
    Lo = Ltot - 2 * PAD

    x_f = x.astype(jnp.float32)

    # Conv weights as (K, Cout, Cin) so each tap is a (Cout, Cin) MXU operand.
    w1r = jnp.transpose(w1, (2, 0, 1)).astype(CONV_DTYPE)     # (K, Cout, Cin)
    w2r = jnp.transpose(w2, (2, 0, 1)).astype(CONV_DTYPE)     # (K, Cout, Cout)
    b1c = b1.reshape(Cout, 1).astype(jnp.float32)
    b2c = b2.reshape(Cout, 1).astype(jnp.float32)
    gammac = gamma.reshape(Cout, 1).astype(jnp.float32)
    betac = beta.reshape(Cout, 1).astype(jnp.float32)

    # Valid-column mask for the batch-gapped layout (built at trace time).
    pos = np.arange(Lo)
    mask = jnp.asarray(((pos % Lpi) < L2).astype(np.float32)[None, :])

    # Cost estimate + VMEM budget capped by actual device capacity.
    conv_itemsize = jnp.dtype(CONV_DTYPE).itemsize
    flops = (2 * K * Lo * Cout * (Cin + Cout)       # two convs
             + 2 * N * Cin * L * L2                 # in-kernel upsample matmul
             + 20 * Cout * Lo)                      # BN + LeakyReLU passes
    io_bytes = (4 * (N * Cin * L + N * Cout * L2 + 4 * Cout + Lo)
                + conv_itemsize * K * Cout * (Cin + Cout))
    scratch_bytes = 4 * Ltot * (Cin + Cout)
    live_bytes = 4 * 4 * Cout * Lo                  # y/z temporaries
    vmem_needed = scratch_bytes + io_bytes + live_bytes
    try:
        cap = getattr(pltpu.get_tpu_info(), "vmem_capacity_bytes", 64 << 20)
    except Exception:
        cap = 64 << 20                              # safe on every generation
    vmem_limit = int(min(max(2 * vmem_needed + (4 << 20), 32 << 20),
                         int(0.85 * cap)))

    vmem = pl.BlockSpec(memory_space=pltpu.MemorySpace.VMEM)
    out = pl.pallas_call(
        _upsample_block_kernel,
        out_shape=jax.ShapeDtypeStruct((N, Cout, L2), jnp.float32),
        in_specs=[vmem] * 8,
        out_specs=vmem,
        scratch_shapes=[
            pltpu.VMEM((Cin, Ltot), jnp.float32),    # xg_sc
            pltpu.VMEM((Cout, Ltot), jnp.float32),   # act_sc
        ],
        compiler_params=pltpu.CompilerParams(vmem_limit_bytes=vmem_limit),
        cost_estimate=pl.CostEstimate(flops=int(flops),
                                      transcendentals=int(2 * Cout),
                                      bytes_accessed=int(io_bytes)),
    )(x_f, w1r, b1c, w2r, b2c, gammac, betac, mask)
    return out


def _reference(x, w1, b1, w2, b2, gamma, beta):
    """Pure-JAX reference mirroring the PyTorch forward (training-mode BN)."""
    x = jnp.repeat(x, 2, axis=-1)

    def conv(inp, w, b):
        y = lax.conv_general_dilated(inp, w, window_strides=(1,),
                                     padding=[(PAD, PAD)],
                                     dimension_numbers=('NCH', 'OIH', 'NCH'))
        return y + b[None, :, None]

    def bn_lrelu(y):
        mean = y.mean(axis=(0, 2), keepdims=True)
        var = ((y - mean) ** 2).mean(axis=(0, 2), keepdims=True)
        z = (y - mean) / jnp.sqrt(var + BN_EPS)
        z = z * gamma[None, :, None] + beta[None, :, None]
        return jnp.where(z > 0, z, NEG_SLOPE * z)

    y = bn_lrelu(conv(x, w1, b1))
    return bn_lrelu(conv(y, w2, b2))


if __name__ == "__main__":
    # Small shapes consistent with the module: batch=2, in_channels=4,
    # out_channels=8, length=16 (output length = 32).
    N, Cin, Cout, L = 2, 4, 8, 16

    key = jax.random.PRNGKey(0)
    k1, k2, k3, k4, kx = jax.random.split(key, 5)

    # Deterministic init (PyTorch-style uniform bounds for conv, BN defaults).
    bound1 = 1.0 / (Cin * KSIZE) ** 0.5
    bound2 = 1.0 / (Cout * KSIZE) ** 0.5
    w1 = jax.random.uniform(k1, (Cout, Cin, KSIZE), jnp.float32, -bound1, bound1)
    b1 = jax.random.uniform(k2, (Cout,), jnp.float32, -bound1, bound1)
    w2 = jax.random.uniform(k3, (Cout, Cout, KSIZE), jnp.float32, -bound2, bound2)
    b2 = jax.random.uniform(k4, (Cout,), jnp.float32, -bound2, bound2)
    gamma = jnp.ones((Cout,), jnp.float32)   # BatchNorm1d default weight
    beta = jnp.zeros((Cout,), jnp.float32)   # BatchNorm1d default bias

    x = jax.random.normal(kx, (N, Cin, L), jnp.float32)

    out = upsample_block(x, w1, b1, w2, b2, gamma, beta)
    out = jax.block_until_ready(out)

    ref = _reference(x, w1, b1, w2, b2, gamma, beta)
    assert out.shape == (N, Cout, 2 * L), out.shape
    assert jnp.allclose(out, ref, rtol=1e-4, atol=1e-4), float(
        jnp.max(jnp.abs(out - ref)))

    print("KERNEL_OK")
</pallas_src>

<mosaic_0001>
module attributes {stable_mosaic.version = 11 : i64} {
  func.func @_upsample_block_kernel(%arg0: memref<2x4x16xf32, #tpu.memory_space<vmem>>, %arg1: memref<9x8x4xf32, #tpu.memory_space<vmem>>, %arg2: memref<8x1xf32, #tpu.memory_space<vmem>>, %arg3: memref<9x8x8xf32, #tpu.memory_space<vmem>>, %arg4: memref<8x1xf32, #tpu.memory_space<vmem>>, %arg5: memref<8x1xf32, #tpu.memory_space<vmem>>, %arg6: memref<8x1xf32, #tpu.memory_space<vmem>>, %arg7: memref<1x248xf32, #tpu.memory_space<vmem>>, %arg8: memref<2x8x32xf32, #tpu.memory_space<vmem>>, %arg9: memref<4x256xf32, #tpu.memory_space<vmem>>, %arg10: memref<8x256xf32, #tpu.memory_space<vmem>>) attributes {dimension_semantics = [], scalar_prefetch = 0 : i64, scratch_operands = 2 : i64, tpu.core_type = #tpu.core_type<tc>} {
    %c0 = arith.constant 0 : index
    %c0_0 = arith.constant 0 : index
    %0 = vector.load %arg7[%c0, %c0_0] : memref<1x248xf32, #tpu.memory_space<vmem>>, vector<1x248xf32>
    %1 = tpu.iota {dimensions = array<i32: 0>} : vector<16x32xi32>
    %2 = tpu.iota {dimensions = array<i32: 1>} : vector<16x32xi32>
    %c2_i32 = arith.constant 2 : i32
    %3 = vector.broadcast %c2_i32 : i32 to vector<16x32xi32>
    %4 = arith.muli %3, %1 : vector<16x32xi32>
    %5 = arith.subi %2, %4 : vector<16x32xi32>
    %c0_i32 = arith.constant 0 : i32
    %6 = vector.broadcast %c0_i32 : i32 to vector<16x32xi32>
    %7 = arith.cmpi sge, %5, %6 : vector<16x32xi32>
    %c1_i32 = arith.constant 1 : i32
    %8 = vector.broadcast %c1_i32 : i32 to vector<16x32xi32>
    %9 = arith.cmpi sle, %5, %8 : vector<16x32xi32>
    %10 = arith.andi %7, %9 : vector<16x32xi1>
    %11 = arith.extui %10 : vector<16x32xi1> to vector<16x32xi32>
    %12 = arith.sitofp %11 : vector<16x32xi32> to vector<16x32xf32>
    %cst = arith.constant 0.000000e+00 : f32
    %13 = vector.broadcast %cst : f32 to vector<4x4xf32>
    %c0_1 = arith.constant 0 : index
    %c0_2 = arith.constant 0 : index
    %14 = vector.load %arg9[%c0_1, %c0_2] : memref<4x256xf32, #tpu.memory_space<vmem>>, vector<4x4xf32>
    tpu.vector_store %arg9[%c0_1, %c0_2], %13 {strides = array<i32>} : memref<4x256xf32, #tpu.memory_space<vmem>>, vector<4x4xf32>,
    %c0_3 = arith.constant 0 : index
    %c0_4 = arith.constant 0 : index
    %c0_5 = arith.constant 0 : index
    %15 = vector.load %arg0[%c0_3, %c0_4, %c0_5] : memref<2x4x16xf32, #tpu.memory_space<vmem>>, vector<1x4x16xf32>
    %16 = vector.shape_cast %15 : vector<1x4x16xf32> to vector<4x16xf32>
    %cst_6 = arith.constant dense<0.000000e+00> : vector<4x32xf32>
    %17 = tpu.matmul %16, %12, %cst_6 {dimension_numbers = #tpu.dot_dimension_numbers<[1], [0], [0], [1], [0, 0, 1, 1], [], []>} : vector<4x16xf32>, vector<16x32xf32>, vector<4x32xf32> -> vector<4x32xf32>
    %c0_7 = arith.constant 0 : index
    %c4 = arith.constant 4 : index
    %18 = vector.load %arg9[%c0_7, %c4] : memref<4x256xf32, #tpu.memory_space<vmem>>, vector<4x32xf32>
    tpu.vector_store %arg9[%c0_7, %c4], %17 {strides = array<i32>} : memref<4x256xf32, #tpu.memory_space<vmem>>, vector<4x32xf32>,
    %cst_8 = arith.constant 0.000000e+00 : f32
    %19 = vector.broadcast %cst_8 : f32 to vector<4x96xf32>
    %c0_9 = arith.constant 0 : index
    %c36 = arith.constant 36 : index
    %20 = vector.load %arg9[%c0_9, %c36] : memref<4x256xf32, #tpu.memory_space<vmem>>, vector<4x96xf32>
    tpu.vector_store %arg9[%c0_9, %c36], %19 {strides = array<i32>} : memref<4x256xf32, #tpu.memory_space<vmem>>, vector<4x96xf32>,
    %c1 = arith.constant 1 : index
    %c0_10 = arith.constant 0 : index
    %c0_11 = arith.constant 0 : index
    %21 = vector.load %arg0[%c1, %c0_10, %c0_11] : memref<2x4x16xf32, #tpu.memory_space<vmem>>, vector<1x4x16xf32>
    %22 = vector.shape_cast %21 : vector<1x4x16xf32> to vector<4x16xf32>
    %cst_12 = arith.constant dense<0.000000e+00> : vector<4x32xf32>
    %23 = tpu.matmul %22, %12, %cst_12 {dimension_numbers = #tpu.dot_dimension_numbers<[1], [0], [0], [1], [0, 0, 1, 1], [], []>} : vector<4x16xf32>, vector<16x32xf32>, vector<4x32xf32> -> vector<4x32xf32>
    %c0_13 = arith.constant 0 : index
    %c132 = arith.constant 132 : index
    %24 = vector.load %arg9[%c0_13, %c132] : memref<4x256xf32, #tpu.memory_space<vmem>>, vector<4x32xf32>
    tpu.vector_store %arg9[%c0_13, %c132], %23 {strides = array<i32>} : memref<4x256xf32, #tpu.memory_space<vmem>>, vector<4x32xf32>,
    %cst_14 = arith.constant 0.000000e+00 : f32
    %25 = vector.broadcast %cst_14 : f32 to vector<4x92xf32>
    %c0_15 = arith.constant 0 : index
    %c164 = arith.constant 164 : index
    %26 = vector.load %arg9[%c0_15, %c164] : memref<4x256xf32, #tpu.memory_space<vmem>>, vector<4x92xf32>
    tpu.vector_store %arg9[%c0_15, %c164], %25 {strides = array<i32>} : memref<4x256xf32, #tpu.memory_space<vmem>>, vector<4x92xf32>,
    %c0_16 = arith.constant 0 : index
    %c0_17 = arith.constant 0 : index
    %c0_18 = arith.constant 0 : index
    %27 = vector.load %arg1[%c0_16, %c0_17, %c0_18] : memref<9x8x4xf32, #tpu.memory_space<vmem>>, vector<1x8x4xf32>
    %28 = vector.shape_cast %27 : vector<1x8x4xf32> to vector<8x4xf32>
    %c0_19 = arith.constant 0 : index
    %c0_20 = arith.constant 0 : index
    %29 = vector.load %arg9[%c0_19, %c0_20] : memref<4x256xf32, #tpu.memory_space<vmem>>, vector<4x248xf32>
    %cst_21 = arith.constant dense<0.000000e+00> : vector<8x248xf32>
    %30 = tpu.matmul %28, %29, %cst_21 {dimension_numbers = #tpu.dot_dimension_numbers<[1], [0], [0], [1], [0, 0, 1, 1], [], []>} : vector<8x4xf32>, vector<4x248xf32>, vector<8x248xf32> -> vector<8x248xf32>
    %c1_22 = arith.constant 1 : index
    %c0_23 = arith.constant 0 : index
    %c0_24 = arith.constant 0 : index
    %31 = vector.load %arg1[%c1_22, %c0_23, %c0_24] : memref<9x8x4xf32, #tpu.memory_space<vmem>>, vector<1x8x4xf32>
    %32 = vector.shape_cast %31 : vector<1x8x4xf32> to vector<8x4xf32>
    %c0_25 = arith.constant 0 : index
    %c1_26 = arith.constant 1 : index
    %33 = vector.load %arg9[%c0_25, %c1_26] : memref<4x256xf32, #tpu.memory_space<vmem>>, vector<4x248xf32>
    %cst_27 = arith.constant dense<0.000000e+00> : vector<8x248xf32>
    %34 = tpu.matmul %32, %33, %cst_27 {dimension_numbers = #tpu.dot_dimension_numbers<[1], [0], [0], [1], [0, 0, 1, 1], [], []>} : vector<8x4xf32>, vector<4x248xf32>, vector<8x248xf32> -> vector<8x248xf32>
    %35 = arith.addf %30, %34 : vector<8x248xf32>
    %c2 = arith.constant 2 : index
    %c0_28 = arith.constant 0 : index
    %c0_29 = arith.constant 0 : index
    %36 = vector.load %arg1[%c2, %c0_28, %c0_29] : memref<9x8x4xf32, #tpu.memory_space<vmem>>, vector<1x8x4xf32>
    %37 = vector.shape_cast %36 : vector<1x8x4xf32> to vector<8x4xf32>
    %c0_30 = arith.constant 0 : index
    %c2_31 = arith.constant 2 : index
    %38 = vector.load %arg9[%c0_30, %c2_31] : memref<4x256xf32, #tpu.memory_space<vmem>>, vector<4x248xf32>
    %cst_32 = arith.constant dense<0.000000e+00> : vector<8x248xf32>
    %39 = tpu.matmul %37, %38, %cst_32 {dimension_numbers = #tpu.dot_dimension_numbers<[1], [0], [0], [1], [0, 0, 1, 1], [], []>} : vector<8x4xf32>, vector<4x248xf32>, vector<8x248xf32> -> vector<8x248xf32>
    %40 = arith.addf %35, %39 : vector<8x248xf32>
    %c3 = arith.constant 3 : index
    %c0_33 = arith.constant 0 : index
    %c0_34 = arith.constant 0 : index
    %41 = vector.load %arg1[%c3, %c0_33, %c0_34] : memref<9x8x4xf32, #tpu.memory_space<vmem>>, vector<1x8x4xf32>
    %42 = vector.shape_cast %41 : vector<1x8x4xf32> to vector<8x4xf32>
    %c0_35 = arith.constant 0 : index
    %c3_36 = arith.constant 3 : index
    %43 = vector.load %arg9[%c0_35, %c3_36] : memref<4x256xf32, #tpu.memory_space<vmem>>, vector<4x248xf32>
    %cst_37 = arith.constant dense<0.000000e+00> : vector<8x248xf32>
    %44 = tpu.matmul %42, %43, %cst_37 {dimension_numbers = #tpu.dot_dimension_numbers<[1], [0], [0], [1], [0, 0, 1, 1], [], []>} : vector<8x4xf32>, vector<4x248xf32>, vector<8x248xf32> -> vector<8x248xf32>
    %45 = arith.addf %40, %44 : vector<8x248xf32>
    %c4_38 = arith.constant 4 : index
    %c0_39 = arith.constant 0 : index
    %c0_40 = arith.constant 0 : index
    %46 = vector.load %arg1[%c4_38, %c0_39, %c0_40] : memref<9x8x4xf32, #tpu.memory_space<vmem>>, vector<1x8x4xf32>
    %47 = vector.shape_cast %46 : vector<1x8x4xf32> to vector<8x4xf32>
    %c0_41 = arith.constant 0 : index
    %c4_42 = arith.constant 4 : index
    %48 = vector.load %arg9[%c0_41, %c4_42] : memref<4x256xf32, #tpu.memory_space<vmem>>, vector<4x248xf32>
    %cst_43 = arith.constant dense<0.000000e+00> : vector<8x248xf32>
    %49 = tpu.matmul %47, %48, %cst_43 {dimension_numbers = #tpu.dot_dimension_numbers<[1], [0], [0], [1], [0, 0, 1, 1], [], []>} : vector<8x4xf32>, vector<4x248xf32>, vector<8x248xf32> -> vector<8x248xf32>
    %50 = arith.addf %45, %49 : vector<8x248xf32>
    %c5 = arith.constant 5 : index
    %c0_44 = arith.constant 0 : index
    %c0_45 = arith.constant 0 : index
    %51 = vector.load %arg1[%c5, %c0_44, %c0_45] : memref<9x8x4xf32, #tpu.memory_space<vmem>>, vector<1x8x4xf32>
    %52 = vector.shape_cast %51 : vector<1x8x4xf32> to vector<8x4xf32>
    %c0_46 = arith.constant 0 : index
    %c5_47 = arith.constant 5 : index
    %53 = vector.load %arg9[%c0_46, %c5_47] : memref<4x256xf32, #tpu.memory_space<vmem>>, vector<4x248xf32>
    %cst_48 = arith.constant dense<0.000000e+00> : vector<8x248xf32>
    %54 = tpu.matmul %52, %53, %cst_48 {dimension_numbers = #tpu.dot_dimension_numbers<[1], [0], [0], [1], [0, 0, 1, 1], [], []>} : vector<8x4xf32>, vector<4x248xf32>, vector<8x248xf32> -> vector<8x248xf32>
    %55 = arith.addf %50, %54 : vector<8x248xf32>
    %c6 = arith.constant 6 : index
    %c0_49 = arith.constant 0 : index
    %c0_50 = arith.constant 0 : index
    %56 = vector.load %arg1[%c6, %c0_49, %c0_50] : memref<9x8x4xf32, #tpu.memory_space<vmem>>, vector<1x8x4xf32>
    %57 = vector.shape_cast %56 : vector<1x8x4xf32> to vector<8x4xf32>
    %c0_51 = arith.constant 0 : index
    %c6_52 = arith.constant 6 : index
    %58 = vector.load %arg9[%c0_51, %c6_52] : memref<4x256xf32, #tpu.memory_space<vmem>>, vector<4x248xf32>
    %cst_53 = arith.constant dense<0.000000e+00> : vector<8x248xf32>
    %59 = tpu.matmul %57, %58, %cst_53 {dimension_numbers = #tpu.dot_dimension_numbers<[1], [0], [0], [1], [0, 0, 1, 1], [], []>} : vector<8x4xf32>, vector<4x248xf32>, vector<8x248xf32> -> vector<8x248xf32>
    %60 = arith.addf %55, %59 : vector<8x248xf32>
    %c7 = arith.constant 7 : index
    %c0_54 = arith.constant 0 : index
    %c0_55 = arith.constant 0 : index
    %61 = vector.load %arg1[%c7, %c0_54, %c0_55] : memref<9x8x4xf32, #tpu.memory_space<vmem>>, vector<1x8x4xf32>
    %62 = vector.shape_cast %61 : vector<1x8x4xf32> to vector<8x4xf32>
    %c0_56 = arith.constant 0 : index
    %c7_57 = arith.constant 7 : index
    %63 = vector.load %arg9[%c0_56, %c7_57] : memref<4x256xf32, #tpu.memory_space<vmem>>, vector<4x248xf32>
    %cst_58 = arith.constant dense<0.000000e+00> : vector<8x248xf32>
    %64 = tpu.matmul %62, %63, %cst_58 {dimension_numbers = #tpu.dot_dimension_numbers<[1], [0], [0], [1], [0, 0, 1, 1], [], []>} : vector<8x4xf32>, vector<4x248xf32>, vector<8x248xf32> -> vector<8x248xf32>
    %65 = arith.addf %60, %64 : vector<8x248xf32>
    %c8 = arith.constant 8 : index
    %c0_59 = arith.constant 0 : index
    %c0_60 = arith.constant 0 : index
    %66 = vector.load %arg1[%c8, %c0_59, %c0_60] : memref<9x8x4xf32, #tpu.memory_space<vmem>>, vector<1x8x4xf32>
    %67 = vector.shape_cast %66 : vector<1x8x4xf32> to vector<8x4xf32>
    %c0_61 = arith.constant 0 : index
    %c8_62 = arith.constant 8 : index
    %68 = vector.load %arg9[%c0_61, %c8_62] : memref<4x256xf32, #tpu.memory_space<vmem>>, vector<4x248xf32>
    %cst_63 = arith.constant dense<0.000000e+00> : vector<8x248xf32>
    %69 = tpu.matmul %67, %68, %cst_63 {dimension_numbers = #tpu.dot_dimension_numbers<[1], [0], [0], [1], [0, 0, 1, 1], [], []>} : vector<8x4xf32>, vector<4x248xf32>, vector<8x248xf32> -> vector<8x248xf32>
    %70 = arith.addf %65, %69 : vector<8x248xf32>
    %c0_64 = arith.constant 0 : index
    %c0_65 = arith.constant 0 : index
    %71 = vector.load %arg2[%c0_64, %c0_65] : memref<8x1xf32, #tpu.memory_space<vmem>>, vector<8x1xf32>
    %72 = vector.broadcast %71 : vector<8x1xf32> to vector<8x248xf32>
    %73 = arith.addf %70, %72 : vector<8x248xf32>
    %74 = vector.broadcast %0 : vector<1x248xf32> to vector<8x248xf32>
    %75 = arith.mulf %73, %74 : vector<8x248xf32>
    %cst_66 = arith.constant dense<0.000000e+00> : vector<8xf32>
    %76 = vector.multi_reduction <add>, %75, %cst_66 [1] : vector<8x248xf32> to vector<8xf32>
    %77 = vector.shape_cast %76 : vector<8xf32> to vector<8x1xf32>
    %78 = arith.mulf %75, %73 : vector<8x248xf32>
    %cst_67 = arith.constant dense<0.000000e+00> : vector<8xf32>
    %79 = vector.multi_reduction <add>, %78, %cst_67 [1] : vector<8x248xf32> to vector<8xf32>
    %80 = vector.shape_cast %79 : vector<8xf32> to vector<8x1xf32>
    %cst_68 = arith.constant 1.562500e-02 : f32
    %81 = vector.broadcast %cst_68 : f32 to vector<8x1xf32>
    %82 = arith.mulf %77, %81 : vector<8x1xf32>
    %cst_69 = arith.constant 1.562500e-02 : f32
    %83 = vector.broadcast %cst_69 : f32 to vector<8x1xf32>
    %84 = arith.mulf %80, %83 : vector<8x1xf32>
    %85 = arith.mulf %82, %82 : vector<8x1xf32>
    %86 = arith.subf %84, %85 : vector<8x1xf32>
    %cst_70 = arith.constant 0.000000e+00 : f32
    %87 = vector.broadcast %cst_70 : f32 to vector<8x1xf32>
    %88 = arith.maximumf %86, %87 : vector<8x1xf32>
    %c0_71 = arith.constant 0 : index
    %c0_72 = arith.constant 0 : index
    %89 = vector.load %arg5[%c0_71, %c0_72] : memref<8x1xf32, #tpu.memory_space<vmem>>, vector<8x1xf32>
    %cst_73 = arith.constant 9.99999974E-6 : f32
    %90 = vector.broadcast %cst_73 : f32 to vector<8x1xf32>
    %91 = arith.addf %88, %90 : vector<8x1xf32>
    %92 = math.rsqrt %91 : vector<8x1xf32>
    %93 = arith.mulf %89, %92 : vector<8x1xf32>
    %c0_74 = arith.constant 0 : index
    %c0_75 = arith.constant 0 : index
    %94 = vector.load %arg6[%c0_74, %c0_75] : memref<8x1xf32, #tpu.memory_space<vmem>>, vector<8x1xf32>
    %95 = arith.mulf %82, %93 : vector<8x1xf32>
    %96 = arith.subf %94, %95 : vector<8x1xf32>
    %97 = vector.broadcast %93 : vector<8x1xf32> to vector<8x248xf32>
    %98 = arith.mulf %75, %97 : vector<8x248xf32>
    %99 = vector.broadcast %96 : vector<8x1xf32> to vector<8x248xf32>
    %100 = arith.addf %98, %99 : vector<8x248xf32>
    %cst_76 = arith.constant 0.000000e+00 : f32
    %101 = vector.broadcast %cst_76 : f32 to vector<8x248xf32>
    %102 = arith.cmpf ogt, %100, %101 : vector<8x248xf32>
    %cst_77 = arith.constant 2.000000e-01 : f32
    %103 = vector.broadcast %cst_77 : f32 to vector<8x248xf32>
    %104 = arith.mulf %103, %100 : vector<8x248xf32>
    %105 = arith.select %102, %100, %104 : vector<8x248xi1>, vector<8x248xf32>
    %106 = vector.broadcast %0 : vector<1x248xf32> to vector<8x248xf32>
    %107 = arith.mulf %105, %106 : vector<8x248xf32>
    %cst_78 = arith.constant 0.000000e+00 : f32
    %108 = vector.broadcast %cst_78 : f32 to vector<8x4xf32>
    %c0_79 = arith.constant 0 : index
    %c0_80 = arith.constant 0 : index
    %109 = vector.load %arg10[%c0_79, %c0_80] : memref<8x256xf32, #tpu.memory_space<vmem>>, vector<8x4xf32>
    tpu.vector_store %arg10[%c0_79, %c0_80], %108 {strides = array<i32>} : memref<8x256xf32, #tpu.memory_space<vmem>>, vector<8x4xf32>,
    %cst_81 = arith.constant 0.000000e+00 : f32
    %110 = vector.broadcast %cst_81 : f32 to vector<8x4xf32>
    %c0_82 = arith.constant 0 : index
    %c252 = arith.constant 252 : index
    %111 = vector.load %arg10[%c0_82, %c252] : memref<8x256xf32, #tpu.memory_space<vmem>>, vector<8x4xf32>
    tpu.vector_store %arg10[%c0_82, %c252], %110 {strides = array<i32>} : memref<8x256xf32, #tpu.memory_space<vmem>>, vector<8x4xf32>,
    %c0_83 = arith.constant 0 : index
    %c4_84 = arith.constant 4 : index
    %112 = vector.load %arg10[%c0_83, %c4_84] : memref<8x256xf32, #tpu.memory_space<vmem>>, vector<8x248xf32>
    tpu.vector_store %arg10[%c0_83, %c4_84], %107 {strides = array<i32>} : memref<8x256xf32, #tpu.memory_space<vmem>>, vector<8x248xf32>,
    %c0_85 = arith.constant 0 : index
    %c0_86 = arith.constant 0 : index
    %c0_87 = arith.constant 0 : index
    %113 = vector.load %arg3[%c0_85, %c0_86, %c0_87] : memref<9x8x8xf32, #tpu.memory_space<vmem>>, vector<1x8x8xf32>
    %114 = vector.shape_cast %113 : vector<1x8x8xf32> to vector<8x8xf32>
    %c0_88 = arith.constant 0 : index
    %c0_89 = arith.constant 0 : index
    %115 = vector.load %arg10[%c0_88, %c0_89] : memref<8x256xf32, #tpu.memory_space<vmem>>, vector<8x248xf32>
    %cst_90 = arith.constant dense<0.000000e+00> : vector<8x248xf32>
    %116 = tpu.matmul %114, %115, %cst_90 {dimension_numbers = #tpu.dot_dimension_numbers<[1], [0], [0], [1], [0, 0, 1, 1], [], []>} : vector<8x8xf32>, vector<8x248xf32>, vector<8x248xf32> -> vector<8x248xf32>
    %c1_91 = arith.constant 1 : index
    %c0_92 = arith.constant 0 : index
    %c0_93 = arith.constant 0 : index
    %117 = vector.load %arg3[%c1_91, %c0_92, %c0_93] : memref<9x8x8xf32, #tpu.memory_space<vmem>>, vector<1x8x8xf32>
    %118 = vector.shape_cast %117 : vector<1x8x8xf32> to vector<8x8xf32>
    %c0_94 = arith.constant 0 : index
    %c1_95 = arith.constant 1 : index
    %119 = vector.load %arg10[%c0_94, %c1_95] : memref<8x256xf32, #tpu.memory_space<vmem>>, vector<8x248xf32>
    %cst_96 = arith.constant dense<0.000000e+00> : vector<8x248xf32>
    %120 = tpu.matmul %118, %119, %cst_96 {dimension_numbers = #tpu.dot_dimension_numbers<[1], [0], [0], [1], [0, 0, 1, 1], [], []>} : vector<8x8xf32>, vector<8x248xf32>, vector<8x248xf32> -> vector<8x248xf32>
    %121 = arith.addf %116, %120 : vector<8x248xf32>
    %c2_97 = arith.constant 2 : index
    %c0_98 = arith.constant 0 : index
    %c0_99 = arith.constant 0 : index
    %122 = vector.load %arg3[%c2_97, %c0_98, %c0_99] : memref<9x8x8xf32, #tpu.memory_space<vmem>>, vector<1x8x8xf32>
    %123 = vector.shape_cast %122 : vector<1x8x8xf32> to vector<8x8xf32>
    %c0_100 = arith.constant 0 : index
    %c2_101 = arith.constant 2 : index
    %124 = vector.load %arg10[%c0_100, %c2_101] : memref<8x256xf32, #tpu.memory_space<vmem>>, vector<8x248xf32>
    %cst_102 = arith.constant dense<0.000000e+00> : vector<8x248xf32>
    %125 = tpu.matmul %123, %124, %cst_102 {dimension_numbers = #tpu.dot_dimension_numbers<[1], [0], [0], [1], [0, 0, 1, 1], [], []>} : vector<8x8xf32>, vector<8x248xf32>, vector<8x248xf32> -> vector<8x248xf32>
    %126 = arith.addf %121, %125 : vector<8x248xf32>
    %c3_103 = arith.constant 3 : index
    %c0_104 = arith.constant 0 : index
    %c0_105 = arith.constant 0 : index
    %127 = vector.load %arg3[%c3_103, %c0_104, %c0_105] : memref<9x8x8xf32, #tpu.memory_space<vmem>>, vector<1x8x8xf32>
    %128 = vector.shape_cast %127 : vector<1x8x8xf32> to vector<8x8xf32>
    %c0_106 = arith.constant 0 : index
    %c3_107 = arith.constant 3 : index
    %129 = vector.load %arg10[%c0_106, %c3_107] : memref<8x256xf32, #tpu.memory_space<vmem>>, vector<8x248xf32>
    %cst_108 = arith.constant dense<0.000000e+00> : vector<8x248xf32>
    %130 = tpu.matmul %128, %129, %cst_108 {dimension_numbers = #tpu.dot_dimension_numbers<[1], [0], [0], [1], [0, 0, 1, 1], [], []>} : vector<8x8xf32>, vector<8x248xf32>, vector<8x248xf32> -> vector<8x248xf32>
    %131 = arith.addf %126, %130 : vector<8x248xf32>
    %c4_109 = arith.constant 4 : index
    %c0_110 = arith.constant 0 : index
    %c0_111 = arith.constant 0 : index
    %132 = vector.load %arg3[%c4_109, %c0_110, %c0_111] : memref<9x8x8xf32, #tpu.memory_space<vmem>>, vector<1x8x8xf32>
    %133 = vector.shape_cast %132 : vector<1x8x8xf32> to vector<8x8xf32>
    %c0_112 = arith.constant 0 : index
    %c4_113 = arith.constant 4 : index
    %134 = vector.load %arg10[%c0_112, %c4_113] : memref<8x256xf32, #tpu.memory_space<vmem>>, vector<8x248xf32>
    %cst_114 = arith.constant dense<0.000000e+00> : vector<8x248xf32>
    %135 = tpu.matmul %133, %134, %cst_114 {dimension_numbers = #tpu.dot_dimension_numbers<[1], [0], [0], [1], [0, 0, 1, 1], [], []>} : vector<8x8xf32>, vector<8x248xf32>, vector<8x248xf32> -> vector<8x248xf32>
    %136 = arith.addf %131, %135 : vector<8x248xf32>
    %c5_115 = arith.constant 5 : index
    %c0_116 = arith.constant 0 : index
    %c0_117 = arith.constant 0 : index
    %137 = vector.load %arg3[%c5_115, %c0_116, %c0_117] : memref<9x8x8xf32, #tpu.memory_space<vmem>>, vector<1x8x8xf32>
    %138 = vector.shape_cast %137 : vector<1x8x8xf32> to vector<8x8xf32>
    %c0_118 = arith.constant 0 : index
    %c5_119 = arith.constant 5 : index
    %139 = vector.load %arg10[%c0_118, %c5_119] : memref<8x256xf32, #tpu.memory_space<vmem>>, vector<8x248xf32>
    %cst_120 = arith.constant dense<0.000000e+00> : vector<8x248xf32>
    %140 = tpu.matmul %138, %139, %cst_120 {dimension_numbers = #tpu.dot_dimension_numbers<[1], [0], [0], [1], [0, 0, 1, 1], [], []>} : vector<8x8xf32>, vector<8x248xf32>, vector<8x248xf32> -> vector<8x248xf32>
    %141 = arith.addf %136, %140 : vector<8x248xf32>
    %c6_121 = arith.constant 6 : index
    %c0_122 = arith.constant 0 : index
    %c0_123 = arith.constant 0 : index
    %142 = vector.load %arg3[%c6_121, %c0_122, %c0_123] : memref<9x8x8xf32, #tpu.memory_space<vmem>>, vector<1x8x8xf32>
    %143 = vector.shape_cast %142 : vector<1x8x8xf32> to vector<8x8xf32>
    %c0_124 = arith.constant 0 : index
    %c6_125 = arith.constant 6 : index
    %144 = vector.load %arg10[%c0_124, %c6_125] : memref<8x256xf32, #tpu.memory_space<vmem>>, vector<8x248xf32>
    %cst_126 = arith.constant dense<0.000000e+00> : vector<8x248xf32>
    %145 = tpu.matmul %143, %144, %cst_126 {dimension_numbers = #tpu.dot_dimension_numbers<[1], [0], [0], [1], [0, 0, 1, 1], [], []>} : vector<8x8xf32>, vector<8x248xf32>, vector<8x248xf32> -> vector<8x248xf32>
    %146 = arith.addf %141, %145 : vector<8x248xf32>
    %c7_127 = arith.constant 7 : index
    %c0_128 = arith.constant 0 : index
    %c0_129 = arith.constant 0 : index
    %147 = vector.load %arg3[%c7_127, %c0_128, %c0_129] : memref<9x8x8xf32, #tpu.memory_space<vmem>>, vector<1x8x8xf32>
    %148 = vector.shape_cast %147 : vector<1x8x8xf32> to vector<8x8xf32>
    %c0_130 = arith.constant 0 : index
    %c7_131 = arith.constant 7 : index
    %149 = vector.load %arg10[%c0_130, %c7_131] : memref<8x256xf32, #tpu.memory_space<vmem>>, vector<8x248xf32>
    %cst_132 = arith.constant dense<0.000000e+00> : vector<8x248xf32>
    %150 = tpu.matmul %148, %149, %cst_132 {dimension_numbers = #tpu.dot_dimension_numbers<[1], [0], [0], [1], [0, 0, 1, 1], [], []>} : vector<8x8xf32>, vector<8x248xf32>, vector<8x248xf32> -> vector<8x248xf32>
    %151 = arith.addf %146, %150 : vector<8x248xf32>
    %c8_133 = arith.constant 8 : index
    %c0_134 = arith.constant 0 : index
    %c0_135 = arith.constant 0 : index
    %152 = vector.load %arg3[%c8_133, %c0_134, %c0_135] : memref<9x8x8xf32, #tpu.memory_space<vmem>>, vector<1x8x8xf32>
    %153 = vector.shape_cast %152 : vector<1x8x8xf32> to vector<8x8xf32>
    %c0_136 = arith.constant 0 : index
    %c8_137 = arith.constant 8 : index
    %154 = vector.load %arg10[%c0_136, %c8_137] : memref<8x256xf32, #tpu.memory_space<vmem>>, vector<8x248xf32>
    %cst_138 = arith.constant dense<0.000000e+00> : vector<8x248xf32>
    %155 = tpu.matmul %153, %154, %cst_138 {dimension_numbers = #tpu.dot_dimension_numbers<[1], [0], [0], [1], [0, 0, 1, 1], [], []>} : vector<8x8xf32>, vector<8x248xf32>, vector<8x248xf32> -> vector<8x248xf32>
    %156 = arith.addf %151, %155 : vector<8x248xf32>
    %c0_139 = arith.constant 0 : index
    %c0_140 = arith.constant 0 : index
    %157 = vector.load %arg4[%c0_139, %c0_140] : memref<8x1xf32, #tpu.memory_space<vmem>>, vector<8x1xf32>
    %158 = vector.broadcast %157 : vector<8x1xf32> to vector<8x248xf32>
    %159 = arith.addf %156, %158 : vector<8x248xf32>
    %160 = vector.broadcast %0 : vector<1x248xf32> to vector<8x248xf32>
    %161 = arith.mulf %159, %160 : vector<8x248xf32>
    %cst_141 = arith.constant dense<0.000000e+00> : vector<8xf32>
    %162 = vector.multi_reduction <add>, %161, %cst_141 [1] : vector<8x248xf32> to vector<8xf32>
    %163 = vector.shape_cast %162 : vector<8xf32> to vector<8x1xf32>
    %164 = arith.mulf %161, %159 : vector<8x248xf32>
    %cst_142 = arith.constant dense<0.000000e+00> : vector<8xf32>
    %165 = vector.multi_reduction <add>, %164, %cst_142 [1] : vector<8x248xf32> to vector<8xf32>
    %166 = vector.shape_cast %165 : vector<8xf32> to vector<8x1xf32>
    %cst_143 = arith.constant 1.562500e-02 : f32
    %167 = vector.broadcast %cst_143 : f32 to vector<8x1xf32>
    %168 = arith.mulf %163, %167 : vector<8x1xf32>
    %cst_144 = arith.constant 1.562500e-02 : f32
    %169 = vector.broadcast %cst_144 : f32 to vector<8x1xf32>
    %170 = arith.mulf %166, %169 : vector<8x1xf32>
    %171 = arith.mulf %168, %168 : vector<8x1xf32>
    %172 = arith.subf %170, %171 : vector<8x1xf32>
    %cst_145 = arith.constant 0.000000e+00 : f32
    %173 = vector.broadcast %cst_145 : f32 to vector<8x1xf32>
    %174 = arith.maximumf %172, %173 : vector<8x1xf32>
    %c0_146 = arith.constant 0 : index
    %c0_147 = arith.constant 0 : index
    %175 = vector.load %arg5[%c0_146, %c0_147] : memref<8x1xf32, #tpu.memory_space<vmem>>, vector<8x1xf32>
    %cst_148 = arith.constant 9.99999974E-6 : f32
    %176 = vector.broadcast %cst_148 : f32 to vector<8x1xf32>
    %177 = arith.addf %174, %176 : vector<8x1xf32>
    %178 = math.rsqrt %177 : vector<8x1xf32>
    %179 = arith.mulf %175, %178 : vector<8x1xf32>
    %c0_149 = arith.constant 0 : index
    %c0_150 = arith.constant 0 : index
    %180 = vector.load %arg6[%c0_149, %c0_150] : memref<8x1xf32, #tpu.memory_space<vmem>>, vector<8x1xf32>
    %181 = arith.mulf %168, %179 : vector<8x1xf32>
    %182 = arith.subf %180, %181 : vector<8x1xf32>
    %183 = vector.broadcast %179 : vector<8x1xf32> to vector<8x248xf32>
    %184 = arith.mulf %161, %183 : vector<8x248xf32>
    %185 = vector.broadcast %182 : vector<8x1xf32> to vector<8x248xf32>
    %186 = arith.addf %184, %185 : vector<8x248xf32>
    %cst_151 = arith.constant 0.000000e+00 : f32
    %187 = vector.broadcast %cst_151 : f32 to vector<8x248xf32>
    %188 = arith.cmpf ogt, %186, %187 : vector<8x248xf32>
    %cst_152 = arith.constant 2.000000e-01 : f32
    %189 = vector.broadcast %cst_152 : f32 to vector<8x248xf32>
    %190 = arith.mulf %189, %186 : vector<8x248xf32>
    %191 = arith.select %188, %186, %190 : vector<8x248xi1>, vector<8x248xf32>
    %192 = vector.extract_strided_slice %191 {offsets = [0, 0], sizes = [8, 32], strides = [1, 1]} : vector<8x248xf32> to vector<8x32xf32>
    %c0_153 = arith.constant 0 : index
    %c0_154 = arith.constant 0 : index
    %c0_155 = arith.constant 0 : index
    %193 = vector.load %arg8[%c0_153, %c0_154, %c0_155] : memref<2x8x32xf32, #tpu.memory_space<vmem>>, vector<1x8x32xf32>
    %194 = vector.shape_cast %193 : vector<1x8x32xf32> to vector<8x32xf32>
    %195 = vector.shape_cast %192 : vector<8x32xf32> to vector<1x8x32xf32>
    tpu.vector_store %arg8[%c0_153, %c0_154, %c0_155], %195 {strides = array<i32>} : memref<2x8x32xf32, #tpu.memory_space<vmem>>, vector<1x8x32xf32>,
    %196 = vector.extract_strided_slice %191 {offsets = [0, 128], sizes = [8, 32], strides = [1, 1]} : vector<8x248xf32> to vector<8x32xf32>
    %c1_156 = arith.constant 1 : index
    %c0_157 = arith.constant 0 : index
    %c0_158 = arith.constant 0 : index
    %197 = vector.load %arg8[%c1_156, %c0_157, %c0_158] : memref<2x8x32xf32, #tpu.memory_space<vmem>>, vector<1x8x32xf32>
    %198 = vector.shape_cast %197 : vector<1x8x32xf32> to vector<8x32xf32>
    %199 = vector.shape_cast %196 : vector<8x32xf32> to vector<1x8x32xf32>
    tpu.vector_store %arg8[%c1_156, %c0_157, %c0_158], %199 {strides = array<i32>} : memref<2x8x32xf32, #tpu.memory_space<vmem>>, vector<1x8x32xf32>,
    return
  }
}

</mosaic_0001>

<bundles_post_ra>
// kernel: upsample_block.1
= control target key start
LH: loop header
LB: loop body
LE: loop exit
PB: predicated region body
PF: predicated region fallthrough
CT: control target
= control target key end

     0   :  { %v31_v0 = vlaneseq  ;;  %v2102_v1 = vmov 0.0|0.0   ;;  %s2395_s0 = inlined_call_operand.vmem [shape: f32[2,4,16], index: 0, kind: input, shape index: {}]   ;;  %s2396_s1 = inlined_call_operand.vmem [shape: f32[9,8,4], index: 1, kind: input, shape index: {}]   ;;  %s2397_s2 = inlined_call_operand.vmem [shape: f32[8,1], index: 2, kind: input, shape index: {}]   ;;  %s2398_s3 = inlined_call_operand.vmem [shape: f32[9,8,8], index: 3, kind: input, shape index: {}]   ;;  %s2399_s4 = inlined_call_operand.vmem [shape: f32[8,1], index: 4, kind: input, shape index: {}]   ;;  %s2400_s5 = inlined_call_operand.vmem [shape: f32[8,1], index: 5, kind: input, shape index: {}]   ;;  %s2401_s6 = inlined_call_operand.vmem [shape: f32[8,1], index: 6, kind: input, shape index: {}]   ;;  %s2402_s7 = inlined_call_operand.vmem [shape: f32[1,248], index: 7, kind: input, shape index: {}]   ;;  %s2403_s8 = inlined_call_operand.hbm [shape: f32[2,8,32], index: 8, kind: output, shape index: {}]  }
   0x1   :  { %2016 = vmatprep.subr.bf16.mxu0 %v2102_v1  ;;  %2019 = vmatprep.subr.bf16.mxu1 %v2102_v1 }
   0x2   :  { %13 = vsyncpa [#allocation5], 0  ;;  %v2164_v2 = vshrl.u32 %v31_v0, 7  ;;  %v35_v3 = vand.u32 127, %v31_v0  ;;  %vm2103_vm0 = vmmov 0   ;;  %v2104_v4 = vmov 0.0  }
   0x3   :  { %2006 = vmatprep.mubr.msk.f32.mxu0 %vm2103_vm0, %v2104_v4  ;;  %2013 = vmatprep.mubr.msk.f32.mxu1 %vm2103_vm0, %v2104_v4  ;;  %v2105_v10 = vmov 1.0|1.0   ;;  %v52_v11 = vld [vmem:[%s2395_s0] sm:$0xf]  ;;  %vm53_vm8 = vcmask 130048   ;;  %vm50_vm9 = vcmask 27648  }
   0x4   :  { %v33_v5 = vadd.s32 8, %v2164_v2  ;;  %v36_v6 = vmul.u32 2, %v2164_v2  ;;  %v1940_v12 = vld [vmem:[%s2395_s0 + $0x4] sm:$0xf]  ;;  %51 = vst.msk [vmem:[#allocation2] sm:$0xf] %vm50_vm9, %v2104_v4 }
   0x5   :  { %s2106_s9 = smov 4   ;;  %vm133_vm10 = vcmask 1043744   ;;  %vm134_vm11 = vcmask 31748   ;;  %vm131_vm12 = vcmask 289824   ;;  %vm230_vm14 = vcmask 31744   ;;  %s2107_s0 = smov 127  }
   0x6   :  { %v37_v7 = vmul.u32 2, %v33_v5  ;;  %v38_v8 = vsub.s32 %v35_v3, %v36_v6  ;;  %vm135_vm13 = vmor %vm134_vm11, %vm133_vm10  ;;  %1090 = vst.msk [vmem:[#allocation3] sm:$0xff] %vm230_vm14, %v2104_v4  ;;  %s2108_s10 = smov 126   ;;  %s2109_s11 = smov 125   ;;  %v1025_v21 = vld [vmem:[%s2397_s2] sm:$0xff]  ;;  %v2115_v22 = vmov 0  }
   0x7   :  { %s2110_s12 = smov 124   ;;  %s2111_s13 = smov 123   ;;  %2071 = vset.pattern.permute.xlu0 %v2115_v22  ;;  %2072 = vset.pattern.permute.xlu1 %v2115_v22  ;;  %vm228_vm15 = vcmask 1039360   ;;  %vm234_vm0 = vcmask 1043456   ;;  %v1944_v25 = vld [vmem:[%s2396_s1 + $0x8] sm:$0xff]  ;;  %v218_v29 = vld [vmem:[%s2396_s1] sm:$0xff] }
   0x8   :  { %v39_v9 = vsub.s32 %v35_v3, %v37_v7  ;;  %vm40_vm1 = vcmp.ge.s32.totalorder %v38_v8, 0  ;;  %vm42_vm2 = vcmp.le.s32.totalorder %v38_v8, 1  ;;  %s2112_s14 = smov 122   ;;  %s2113_s15 = smov 121   ;;  %v1951_v33 = vld [vmem:[%s2396_s1 + $0x10] sm:$0xff]  ;;  %v1955_v37 = vld [vmem:[%s2396_s1 + $0x18] sm:$0xff] }
   0x9   :  { %vm44_vm3 = vmand %vm40_vm1, %vm42_vm2  ;;  %s2114_s16 = smov 120   ;;  %vm397_vm1 = vcmask 1031168   ;;  %vm488_vm2 = vcmask 1022976   ;;  %v1959_v41 = vld [vmem:[%s2396_s1 + $0x20] sm:$0xff]  ;;  %v1963_v45 = vld [vmem:[%s2396_s1 + $0x28] sm:$0xff]  ;;  %v1036_v56 = vsub.s32 0, %v2164_v2 }
   0xa   :  { %vm41_vm4 = vcmp.ge.s32.totalorder %v39_v9, 0  ;;  %vm43_vm5 = vcmp.le.s32.totalorder %v39_v9, 1  ;;  %v1967_v49 = vld [vmem:[%s2396_s1 + $0x30] sm:$0xff]  ;;  %v1971_v53 = vld [vmem:[%s2396_s1 + $0x38] sm:$0xff]  ;;  %v1975_v55 = vld [vmem:[%s2396_s1 + $0x40] sm:$0xff]  ;;  %v1040_v58 = vsub.s32 1, %v2164_v2 }
   0xb   :  { %vm45_vm6 = vmand %vm41_vm4, %vm43_vm5  ;;  %vm670_vm4 = vcmask 1006592   ;;  %vm761_vm5 = vcmask 998400   ;;  %v30_v57 = vld [vmem:[%s2402_s7] sm:$0x3]  ;;  %vm1102_vm11 = vcmask 1047584  }
   0xc   :  { %vm2017_vm7 = vmpackc.low %vm45_vm6, %vm44_vm3  ;;  %vm579_vm3 = vcmask 1014784   ;;  %vm852_vm6 = vcmask 990208   ;;  %v2279_v60 = vrot.slane %v30_v57, %v1036_v56  ;;  %v2281_v62 = vrot.slane %v30_v57, %v1040_v58  ;;  %v2296_v22 = vld [vmem:[%s2401_s6] sm:$0xff]  ;;  %v1984_v56 = vld [vmem:[%s2398_s3 + $0x18] sm:$0xff] }
   0xd   :  { %2018 = vmatpush3.bf16.msk.msra.mxu0 %vm2017_vm7, %v2105_v10  ;;  %2021 = vmatpush3.bf16.msk.msra.mxu1 %vm2017_vm7, %v2105_v10  ;;  %vm943_vm7 = vcmask 982016  }
  0x10   :  { %2007 = vmatmul.mubr.msk.f32.vlgmr.msra.gmra.mrb[0].mxu0 %vm53_vm8, %v52_v11  ;;  %2014 = vmatmul.mubr.msk.f32.vlgmr.msra.gmra.mrb[0].mxu1 %vm53_vm8, %v1940_v12  ;;  %vm1091_vm8 = vcmask 1048544  }
  0x11   :  { %303 = vmatprep.mubr.f32.mxu0 %v2104_v4  ;;  %1187 = vmatprep.mubr.f32.mxu1 %v2104_v4  ;;  %1092 = vst.msk [vmem:[#allocation3 + $0x8] sm:$0xff] %vm1091_vm8, %v2104_v4 }
  0xe3   :  { %v123_v13 = vpop.f32.mrb[0].mxu0  ;;  %v208_v14 = vpop.f32.mrb[0].mxu1 }
  0xe4   :  { %128 = vrot.lane.b32.xlu0 %v123_v13, %s2106_s9  ;;  %v2008_v15 = vpop.f32.mrb[1].mxu0  ;;  %v2015_v16 = vpop.f32.mrb[1].mxu1 }
  0xe8   :  { %213 = vrot.lane.b32.xlu0 %v208_v14, %s2106_s9 }
 0x156   :  { %v129_v17 = vpop.permute.xlu0 %128 }
 0x157   :  { %132 = vst.msk [vmem:[#allocation2] sm:$0xf] %vm131_vm12, %v129_v17 }
 0x158   :  { %136 = vst.msk [vmem:[#allocation2] sm:$0xff] %vm135_vm13, %v2104_v4  ;;  %vm1915_vm13 = vcmask 261120  }
 0x15a   :  { %v214_v18 = vpop.permute.xlu0 %213 }
 0x15b   :  { %216 = vst.msk [vmem:[#allocation2 + $0x4] sm:$0xf] %vm131_vm12, %v214_v18  ;;  %vm1119_vm12 = vcmask 64512  }
 0x15c   :  { %217 = vst.msk [vmem:[#allocation2 + $0x4] sm:$0xf] %vm133_vm10, %v2104_v4 }
 0x163   :  { %v219_v19 = vld [vmem:[#allocation2] sm:$0xff] }
 0x164   :  { %224 = vrot.lane.b32.xlu1 %v219_v19, %s2107_s0  ;;  %v223_v20 = vcombine.high %v219_v19, %v219_v19  ;;  %393 = vrot.lane.b32.xlu0 %v219_v19, %s2108_s10 }
 0x168   :  { %226 = vrot.lane.b32.xlu1 %v223_v20, %s2107_s0  ;;  %484 = vrot.lane.b32.xlu0 %v219_v19, %s2109_s11 }
 0x16c   :  { %395 = vrot.lane.b32.xlu1 %v223_v20, %s2108_s10  ;;  %575 = vrot.lane.b32.xlu0 %v219_v19, %s2110_s12 }
 0x170   :  { %486 = vrot.lane.b32.xlu1 %v223_v20, %s2109_s11  ;;  %666 = vrot.lane.b32.xlu0 %v219_v19, %s2111_s13 }
 0x174   :  { %577 = vrot.lane.b32.xlu1 %v223_v20, %s2110_s12  ;;  %757 = vrot.lane.b32.xlu0 %v219_v19, %s2112_s14 }
 0x178   :  { %668 = vrot.lane.b32.xlu1 %v223_v20, %s2111_s13  ;;  %848 = vrot.lane.b32.xlu0 %v219_v19, %s2113_s15 }
 0x17c   :  { %759 = vrot.lane.b32.xlu1 %v223_v20, %s2112_s14  ;;  %939 = vrot.lane.b32.xlu0 %v219_v19, %s2114_s16 }
 0x180   :  { %850 = vrot.lane.b32.xlu1 %v223_v20, %s2113_s15  ;;  %1028 = vperm.xlu0 %2071, %v1025_v21  }
 0x184   :  { %941 = vrot.lane.b32.xlu1 %v223_v20, %s2114_s16 }
 0x1d6   :  { %v225_v23 = vpop.permute.xlu1 %224  ;;  %v394_v28 = vpop.permute.xlu0 %393 }
 0x1da   :  { %v227_v24 = vpop.permute.xlu1 %226  ;;  %v485_v32 = vpop.permute.xlu0 %484 }
 0x1db   :  { %v229_v26 = vsel %vm228_vm15, %v225_v23, %v227_v24  ;;  %1945 = vmatprep.subr.msk.mxu0 %vm234_vm0, %v227_v24 }
 0x1dc   :  { %1946 = vmatpush1.msk.msra.mxu0 %vm234_vm0, %v229_v26 }
 0x1dd   :  { %1947 = vmatmul.mubr.msk.f32.vlgmr.msra.gmra.mrb[2].mxu0 %vm230_vm14, %v1944_v25  ;;  %1948 = vmatprep.subr.msk.mxu0 %vm234_vm0, %v223_v20 }
 0x1de   :  { %1949 = vmatpush1.msk.msra.mxu0 %vm234_vm0, %v219_v19  ;;  %381 = vmatprep.mubr.f32.mxu0 %v2104_v4  ;;  %v396_v27 = vpop.permute.xlu1 %395  ;;  %v576_v36 = vpop.permute.xlu0 %575  ;;  %v2290_v19 = vld [vmem:[%s2400_s5] sm:$0xff] }
 0x1df   :  { %1952 = vmatprep.subr.msk.mxu0 %vm234_vm0, %v396_v27  ;;  %v398_v30 = vsel %vm397_vm1, %v394_v28, %v396_v27 }
 0x1e2   :  { %v487_v31 = vpop.permute.xlu1 %486  ;;  %v667_v40 = vpop.permute.xlu0 %666 }
 0x1e3   :  { %v489_v34 = vsel %vm488_vm2, %v485_v32, %v487_v31 }
 0x1e5   :  { %1950 = vmatmul.mubr.msk.f32.vlgmr.msra.gmra.mrb[2].mxu0 %vm230_vm14, %v218_v29 }
 0x1e6   :  { %1953 = vmatpush1.msk.msra.mxu0 %vm234_vm0, %v398_v30  ;;  %470 = vmatprep.mubr.f32.mxu0 %v2104_v4  ;;  %v578_v35 = vpop.permute.xlu1 %577  ;;  %v758_v44 = vpop.permute.xlu0 %757 }
 0x1e7   :  { %1956 = vmatprep.subr.msk.mxu0 %vm234_vm0, %v487_v31  ;;  %v580_v38 = vsel %vm579_vm3, %v576_v36, %v578_v35 }
 0x1ea   :  { %v669_v39 = vpop.permute.xlu1 %668  ;;  %v849_v48 = vpop.permute.xlu0 %848 }
 0x1eb   :  { %v671_v42 = vsel %vm670_vm4, %v667_v40, %v669_v39 }
 0x1ed   :  { %1954 = vmatmul.mubr.msk.f32.vlgmr.msra.gmra.mrb[2].mxu0 %vm230_vm14, %v1951_v33 }
 0x1ee   :  { %1957 = vmatpush1.msk.msra.mxu0 %vm234_vm0, %v489_v34  ;;  %561 = vmatprep.mubr.f32.mxu0 %v2104_v4  ;;  %v760_v43 = vpop.permute.xlu1 %759  ;;  %v940_v52 = vpop.permute.xlu0 %939 }
 0x1ef   :  { %1960 = vmatprep.subr.msk.mxu0 %vm234_vm0, %v578_v35  ;;  %v762_v46 = vsel %vm761_vm5, %v758_v44, %v760_v43 }
 0x1f2   :  { %v851_v47 = vpop.permute.xlu1 %850 }
 0x1f3   :  { %v853_v50 = vsel %vm852_vm6, %v849_v48, %v851_v47  ;;  %v1105_v48 = vld [vmem:[%s2398_s3] sm:$0xff] }
 0x1f5   :  { %1958 = vmatmul.mubr.msk.f32.vlgmr.msra.gmra.mrb[2].mxu0 %vm230_vm14, %v1955_v37 }
 0x1f6   :  { %1961 = vmatpush1.msk.msra.mxu0 %vm234_vm0, %v580_v38  ;;  %652 = vmatprep.mubr.f32.mxu0 %v2104_v4  ;;  %v942_v51 = vpop.permute.xlu1 %941 }
 0x1f7   :  { %1964 = vmatprep.subr.msk.mxu0 %vm234_vm0, %v669_v39  ;;  %v944_v54 = vsel %vm943_vm7, %v940_v52, %v942_v51  ;;  %v1982_v52 = vld [vmem:[%s2398_s3 + $0x10] sm:$0xff] }
 0x1fd   :  { %1962 = vmatmul.mubr.msk.f32.vlgmr.msra.gmra.mrb[2].mxu0 %vm230_vm14, %v1959_v41 }
 0x1fe   :  { %1965 = vmatpush1.msk.msra.mxu0 %vm234_vm0, %v671_v42  ;;  %743 = vmatprep.mubr.f32.mxu0 %v2104_v4  ;;  %v1863_v42 = vld [vmem:[%s2399_s4] sm:$0xff] }
 0x1ff   :  { %1968 = vmatprep.subr.msk.mxu0 %vm234_vm0, %v760_v43  ;;  %v1029_v59 = vpop.permute.xlu0 %1028 }
 0x205   :  { %1966 = vmatmul.mubr.msk.f32.vlgmr.msra.gmra.mrb[2].mxu0 %vm230_vm14, %v1963_v45  ;;  %v1979_v45 = vld [vmem:[%s2398_s3 + $0x8] sm:$0xff] }
 0x206   :  { %1969 = vmatpush1.msk.msra.mxu0 %vm234_vm0, %v762_v46  ;;  %834 = vmatprep.mubr.f32.mxu0 %v2104_v4 }
 0x207   :  { %1972 = vmatprep.subr.msk.mxu0 %vm234_vm0, %v851_v47 }
 0x20d   :  { %1970 = vmatmul.mubr.msk.f32.vlgmr.msra.gmra.mrb[2].mxu0 %vm230_vm14, %v1967_v49 }
 0x20e   :  { %1973 = vmatpush1.msk.msra.mxu0 %vm234_vm0, %v853_v50  ;;  %925 = vmatprep.mubr.f32.mxu0 %v2104_v4 }
 0x20f   :  { %1976 = vmatprep.subr.msk.mxu0 %vm234_vm0, %v942_v51 }
 0x215   :  { %1974 = vmatmul.mubr.msk.f32.vlgmr.msra.gmra.mrb[2].mxu0 %vm230_vm14, %v1971_v53 }
 0x216   :  { %1977 = vmatpush1.msk.msra.mxu0 %vm234_vm0, %v944_v54  ;;  %1016 = vmatprep.mubr.f32.mxu0 %v2104_v4 }
 0x21d   :  { %1978 = vmatmul.mubr.msk.f32.vlgmr.msra.gmra.mrb[2].mxu0 %vm230_vm14, %v1975_v55 }
 0x2f0   :  { %v1018_v61 = vpop.f32.mrb[2].mxu0 }
 0x2f1   :  { %v1031_v63 = vadd.f32 %v1029_v59, %v1018_v61  ;;  %v1020_v0 = vpop.f32.mrb[3].mxu0  ;;  %v1986_v61 = vld [vmem:[%s2398_s3 + $0x20] sm:$0xff] }
 0x2f2   :  { %v1032_v1 = vadd.f32 %v1029_v59, %v1020_v0 }
 0x2f3   :  { %v1044_v3 = vmul.f32 %v2279_v60, %v1031_v63 }
 0x2f4   :  { %v1045_v5 = vmul.f32 %v2281_v62, %v1032_v1 }
 0x2f5   :  { %v1050_v8 = vmul.f32 %v1044_v3, %v1031_v63 }
 0x2f6   :  { %v1051_v6 = vmul.f32 %v1045_v5, %v1032_v1  ;;  %v1046_v7 = vsel %vm943_vm7, %v1045_v5, 0.0 }
 0x2f7   :  { %v1047_v9 = vadd.f32 %v1046_v7, %v1044_v3 }
 0x2f8   :  { %v1052_v2 = vsel %vm943_vm7, %v1051_v6, 0.0 }
 0x2f9   :  { %1048 = vadd.xlane.f32.xlu1 %v1047_v9  ;;  %v1053_v10 = vadd.f32 %v1052_v2, %v1050_v8  ;;  %v1990_v8 = vld [vmem:[%s2398_s3 + $0x30] sm:$0xff] }
 0x2fb   :  { %1054 = vadd.xlane.f32.xlu0 %v1053_v10 }
 0x386   :  { %v1049_v11 = vpop.xlane.xlu1 %1048 }
 0x387   :  { %v1056_v12 = vmul.f32 0.015625, %v1049_v11  ;;  %v1992_v11 = vld [vmem:[%s2398_s3 + $0x38] sm:$0xff] }
 0x388   :  { %v1055_v13 = vpop.xlane.xlu0 %1054 }
 0x389   :  { %v1058_v14 = vmul.f32 %v1056_v12, %v1056_v12  ;;  %v1057_v15 = vmul.f32 0.015625, %v1055_v13 }
 0x38b   :  { %v1059_v16 = vsub.f32 %v1057_v15, %v1058_v14  ;;  %v1994_v14 = vld [vmem:[%s2398_s3 + $0x40] sm:$0xff] }
 0x38d   :  { %v1060_v17 = vmax.f32 %v1059_v16, 0.0 }
 0x38f   :  { %v1062_v18 = vadd.f32 1e-05, %v1060_v17 }
 0x391   :  { %2074 = vrsqrt.f32 %v1062_v18 }
 0x39b   :  { %v2075_v20 = vpop.eup %2074 }
 0x39c   :  { %v1064_v21 = vmul.f32 %v2075_v20, %v2290_v19 }
 0x39e   :  { %1070 = vperm.xlu1 %2072, %v1064_v21   ;;  %v1066_v23 = vmul.f32 %v1064_v21, %v1056_v12 }
 0x3a0   :  { %v1067_v24 = vsub.f32 %v2296_v22, %v1066_v23 }
 0x3a2   :  { %1077 = vperm.xlu0 %2071, %v1067_v24  }
 0x41d   :  { %v1071_v25 = vpop.permute.xlu1 %1070 }
 0x41e   :  { %v1073_v26 = vmul.f32 %v1071_v25, %v1044_v3  ;;  %v1074_v27 = vmul.f32 %v1071_v25, %v1045_v5  ;;  %v1988_v3 = vld [vmem:[%s2398_s3 + $0x28] sm:$0xff]  ;;  %s2116_s3 = smov [#allocation4]  }
 0x41f   :  { %s1924_s19 = sshll.u32 %s2116_s3, 4  ;;  %s1925_s19 = int_to_ptr.vmem [resolvable:$true] %s1924_s19 }
 0x420   :  { %s2078_s20 = scalar_lea.vmem %s1925_s19, 256  ;;  %p2083_p1 = scmp.lt.s32.totalorder %s1925_s19, %s1925_s19 }
 0x421   :  { %v1078_v28 = vpop.permute.xlu0 %1077  ;;  %p2079_p0 = scmp.ne.s32.totalorder %s1925_s19, %s2078_s20  ;;  %p2084_p2 = scmp.lt.s32.totalorder %s2078_s20, %s2078_s20 }
 0x422   :  { %v1080_v29 = vadd.f32 %v1078_v28, %v1073_v26  ;;  %v1081_v30 = vadd.f32 %v1078_v28, %v1074_v27 }
 0x423   :  { %p2085_p3 = por %p2084_p2, %p2083_p1 }
 0x424   :  { %vm1082_vm9 = vcmp.gt.f32.partialorder %v1080_v29, 0.0  ;;  %v1084_v31 = vmul.f32 0.2, %v1080_v29  ;;  %v1085_v32 = vmul.f32 0.2, %v1081_v30  ;;  %vm1083_vm10 = vcmp.gt.f32.partialorder %v1081_v30, 0.0 }
 0x425   :  { %p2086_p4 = pnand %p2085_p3, %p2079_p0 }
 0x426   :  { %v1086_v33 = vsel %vm1082_vm9, %v1080_v29, %v1084_v31  ;;  %v1087_v35 = vsel %vm1083_vm10, %v1081_v30, %v1085_v32 }
 0x427   :  { %v1088_v34 = vmul.f32 %v1086_v33, %v2279_v60  ;;  %v1089_v36 = vmul.f32 %v1087_v35, %v2281_v62 }
 0x429   :  { %1095 = vrot.lane.b32.xlu1 %v1088_v34, %s2106_s9 }
 0x42d   :  { %1097 = vrot.lane.b32.xlu1 %v1089_v36, %s2106_s9 }
 0x49b   :  { %v1096_v37 = vpop.permute.xlu1 %1095 }
 0x49c   :  { %1103 = vst.msk [vmem:[#allocation3] sm:$0xff] %vm1102_vm11, %v1096_v37 }
 0x49f   :  { %v1098_v38 = vpop.permute.xlu1 %1097 }
 0x4a0   :  { %v1099_v39 = vsel %vm230_vm14, %v1096_v37, %v1098_v38 }
 0x4a1   :  { %1104 = vst.msk [vmem:[#allocation3 + $0x8] sm:$0xff] %vm579_vm3, %v1099_v39 }
 0x4a3   :  { %v1106_v40 = vld [vmem:[#allocation3] sm:$0xff] }
 0x4a4   :  { %1112 = vrot.lane.b32.xlu0 %v1106_v40, %s2107_s0 }
 0x4a8   :  { %1270 = vrot.lane.b32.xlu0 %v1106_v40, %s2108_s10  ;;  %v1107_v41 = vld [vmem:[#allocation3 + $0x8] sm:$0xff] }
 0x4a9   :  { %1114 = vrot.lane.b32.xlu1 %v1107_v41, %s2107_s0 }
 0x4ac   :  { %1355 = vrot.lane.b32.xlu0 %v1106_v40, %s2109_s11 }
 0x4ad   :  { %1272 = vrot.lane.b32.xlu1 %v1107_v41, %s2108_s10 }
 0x4b0   :  { %1440 = vrot.lane.b32.xlu0 %v1106_v40, %s2110_s12 }
 0x4b1   :  { %1357 = vrot.lane.b32.xlu1 %v1107_v41, %s2109_s11 }
 0x4b4   :  { %1525 = vrot.lane.b32.xlu0 %v1106_v40, %s2111_s13 }
 0x4b5   :  { %1442 = vrot.lane.b32.xlu1 %v1107_v41, %s2110_s12 }
 0x4b8   :  { %1610 = vrot.lane.b32.xlu0 %v1106_v40, %s2112_s14 }
 0x4b9   :  { %1527 = vrot.lane.b32.xlu1 %v1107_v41, %s2111_s13 }
 0x4bc   :  { %1695 = vrot.lane.b32.xlu0 %v1106_v40, %s2113_s15 }
 0x4bd   :  { %1612 = vrot.lane.b32.xlu1 %v1107_v41, %s2112_s14 }
 0x4c0   :  { %1780 = vrot.lane.b32.xlu0 %v1106_v40, %s2114_s16 }
 0x4c1   :  { %1697 = vrot.lane.b32.xlu1 %v1107_v41, %s2113_s15 }
 0x4c4   :  { %1866 = vperm.xlu0 %2071, %v1863_v42  }
 0x4c5   :  { %1782 = vrot.lane.b32.xlu1 %v1107_v41, %s2114_s16 }
 0x516   :  { %v1113_v43 = vpop.permute.xlu0 %1112 }
 0x51a   :  { %v1271_v49 = vpop.permute.xlu0 %1270 }
 0x51b   :  { %v1115_v44 = vpop.permute.xlu1 %1114 }
 0x51c   :  { %v1116_v46 = vsel %vm228_vm15, %v1113_v43, %v1115_v44  ;;  %1123 = vmatprep.subr.mxu1 %v1115_v44 }
 0x51d   :  { %1124 = vmatpush1.msra.mxu1 %v1116_v46 }
 0x51e   :  { %1980 = vmatmul.mubr.msk.f32.vlgmr.msra.gmra.mrb[2].mxu1 %vm1119_vm12, %v1979_v45  ;;  %1197 = vmatprep.subr.mxu1 %v1107_v41  ;;  %v1356_v53 = vpop.permute.xlu0 %1355 }
 0x51f   :  { %1198 = vmatpush1.msra.mxu1 %v1106_v40  ;;  %v1273_v47 = vpop.permute.xlu1 %1272  ;;  %1261 = vmatprep.mubr.f32.mxu1 %v2104_v4 }
 0x520   :  { %1280 = vmatprep.subr.mxu1 %v1273_v47  ;;  %v1274_v50 = vsel %vm397_vm1, %v1271_v49, %v1273_v47 }
 0x522   :  { %v1441_v57 = vpop.permute.xlu0 %1440 }
 0x523   :  { %v1358_v51 = vpop.permute.xlu1 %1357 }
 0x524   :  { %v1359_v54 = vsel %vm488_vm2, %v1356_v53, %v1358_v51 }
 0x526   :  { %1981 = vmatmul.mubr.msk.f32.vlgmr.msra.gmra.mrb[2].mxu1 %vm1119_vm12, %v1105_v48  ;;  %v1526_v63 = vpop.permute.xlu0 %1525 }
 0x527   :  { %1281 = vmatpush1.msra.mxu1 %v1274_v50  ;;  %1344 = vmatprep.mubr.f32.mxu1 %v2104_v4  ;;  %v1443_v55 = vpop.permute.xlu1 %1442 }
 0x528   :  { %1365 = vmatprep.subr.mxu1 %v1358_v51  ;;  %v1444_v58 = vsel %vm579_vm3, %v1441_v57, %v1443_v55 }
 0x52a   :  { %v1611_v5 = vpop.permute.xlu0 %1610 }
 0x52b   :  { %v1528_v59 = vpop.permute.xlu1 %1527 }
 0x52c   :  { %v1529_v0 = vsel %vm670_vm4, %v1526_v63, %v1528_v59 }
 0x52e   :  { %1983 = vmatmul.mubr.msk.f32.vlgmr.msra.gmra.mrb[2].mxu1 %vm1119_vm12, %v1982_v52  ;;  %v1696_v9 = vpop.permute.xlu0 %1695 }
 0x52f   :  { %1366 = vmatpush1.msra.mxu1 %v1359_v54  ;;  %1429 = vmatprep.mubr.f32.mxu1 %v2104_v4  ;;  %v1613_v1 = vpop.permute.xlu1 %1612 }
 0x530   :  { %1450 = vmatprep.subr.mxu1 %v1443_v55  ;;  %v1614_v6 = vsel %vm761_vm5, %v1611_v5, %v1613_v1 }
 0x532   :  { %v1781_v12 = vpop.permute.xlu0 %1780 }
 0x533   :  { %v1698_v7 = vpop.permute.xlu1 %1697 }
 0x534   :  { %v1699_v2 = vsel %vm852_vm6, %v1696_v9, %v1698_v7 }
 0x536   :  { %1985 = vmatmul.mubr.msk.f32.vlgmr.msra.gmra.mrb[2].mxu1 %vm1119_vm12, %v1984_v56 }
 0x537   :  { %1451 = vmatpush1.msra.mxu1 %v1444_v58  ;;  %1514 = vmatprep.mubr.f32.mxu1 %v2104_v4  ;;  %v1783_v10 = vpop.permute.xlu1 %1782 }
 0x538   :  { %1535 = vmatprep.subr.mxu1 %v1528_v59  ;;  %v1784_v13 = vsel %vm943_vm7, %v1781_v12, %v1783_v10 }
 0x53e   :  { %1987 = vmatmul.mubr.msk.f32.vlgmr.msra.gmra.mrb[2].mxu1 %vm1119_vm12, %v1986_v61 }
 0x53f   :  { %1536 = vmatpush1.msra.mxu1 %v1529_v0  ;;  %1599 = vmatprep.mubr.f32.mxu1 %v2104_v4 }
 0x540   :  { %1620 = vmatprep.subr.mxu1 %v1613_v1 }
 0x543   :  { %v1867_v15 = vpop.permute.xlu0 %1866 }
 0x546   :  { %1989 = vmatmul.mubr.msk.f32.vlgmr.msra.gmra.mrb[2].mxu1 %vm1119_vm12, %v1988_v3 }
 0x547   :  { %1621 = vmatpush1.msra.mxu1 %v1614_v6  ;;  %1684 = vmatprep.mubr.f32.mxu1 %v2104_v4 }
 0x548   :  { %1705 = vmatprep.subr.mxu1 %v1698_v7 }
 0x54e   :  { %1991 = vmatmul.mubr.msk.f32.vlgmr.msra.gmra.mrb[2].mxu1 %vm1119_vm12, %v1990_v8 }
 0x54f   :  { %1706 = vmatpush1.msra.mxu1 %v1699_v2  ;;  %1769 = vmatprep.mubr.f32.mxu1 %v2104_v4 }
 0x550   :  { %1790 = vmatprep.subr.mxu1 %v1783_v10 }
 0x556   :  { %1993 = vmatmul.mubr.msk.f32.vlgmr.msra.gmra.mrb[2].mxu1 %vm1119_vm12, %v1992_v11 }
 0x557   :  { %1791 = vmatpush1.msra.mxu1 %v1784_v13  ;;  %1854 = vmatprep.mubr.f32.mxu1 %v2104_v4 }
 0x55e   :  { %1995 = vmatmul.mubr.msk.f32.vlgmr.msra.gmra.mrb[2].mxu1 %vm1119_vm12, %v1994_v14 }
 0x631   :  { %v1856_v16 = vpop.f32.mrb[2].mxu1 }
 0x632   :  { %v1869_v17 = vadd.f32 %v1867_v15, %v1856_v16  ;;  %v1858_v18 = vpop.f32.mrb[3].mxu1 }
 0x633   :  { %v1870_v20 = vadd.f32 %v1867_v15, %v1858_v18 }
 0x634   :  { %v1871_v21 = vmul.f32 %v1869_v17, %v2279_v60 }
 0x635   :  { %v1872_v23 = vmul.f32 %v1870_v20, %v2281_v62 }
 0x636   :  { %v1877_v26 = vmul.f32 %v1871_v21, %v1869_v17 }
 0x637   :  { %v1878_v24 = vmul.f32 %v1872_v23, %v1870_v20  ;;  %v1873_v25 = vsel %vm943_vm7, %v1872_v23, 0.0 }
 0x638   :  { %v1874_v4 = vadd.f32 %v1873_v25, %v1871_v21 }
 0x639   :  { %v1879_v27 = vsel %vm943_vm7, %v1878_v24, 0.0 }
 0x63a   :  { %1875 = vadd.xlane.f32.xlu1 %v1874_v4  ;;  %v1880_v28 = vadd.f32 %v1879_v27, %v1877_v26 }
 0x63c   :  { %1881 = vadd.xlane.f32.xlu0 %v1880_v28 }
 0x6c7   :  { %v1876_v29 = vpop.xlane.xlu1 %1875 }
 0x6c8   :  { %v1883_v30 = vmul.f32 0.015625, %v1876_v29 }
 0x6c9   :  { %v1882_v31 = vpop.xlane.xlu0 %1881 }
 0x6ca   :  { %v1885_v32 = vmul.f32 %v1883_v30, %v1883_v30  ;;  %v1884_v33 = vmul.f32 0.015625, %v1882_v31 }
 0x6cc   :  { %v1886_v34 = vsub.f32 %v1884_v33, %v1885_v32 }
 0x6ce   :  { %v1887_v35 = vmax.f32 %v1886_v34, 0.0 }
 0x6d0   :  { %v1889_v60 = vadd.f32 1e-05, %v1887_v35 }
 0x6d2   :  { %2076 = vrsqrt.f32 %v1889_v60 }
 0x6dc   :  { %v2077_v62 = vpop.eup %2076 }
 0x6dd   :  { %v1891_v36 = vmul.f32 %v2077_v62, %v2290_v19 }
 0x6df   :  { %1897 = vperm.xlu0 %2071, %v1891_v36   ;;  %v1893_v37 = vmul.f32 %v1891_v36, %v1883_v30 }
 0x6e1   :  { %v1894_v38 = vsub.f32 %v2296_v22, %v1893_v37 }
 0x6e3   :  { %1904 = vperm.xlu1 %2072, %v1894_v38  }
 0x75e   :  { %v1898_v39 = vpop.permute.xlu0 %1897 }
 0x75f   :  { %v1900_v40 = vmul.f32 %v1898_v39, %v1871_v21  ;;  %v1901_v41 = vmul.f32 %v1898_v39, %v1872_v23 }
 0x762   :  { %v1905_v42 = vpop.permute.xlu1 %1904 }
 0x763   :  { %v1907_v43 = vadd.f32 %v1905_v42, %v1900_v40  ;;  %v1908_v44 = vadd.f32 %v1905_v42, %v1901_v41 }
 0x765   :  { %vm1909_vm14 = vcmp.gt.f32.partialorder %v1907_v43, 0.0  ;;  %vm1910_vm15 = vcmp.gt.f32.partialorder %v1908_v44, 0.0  ;;  %v1911_v45 = vmul.f32 0.2, %v1907_v43  ;;  %v1912_v46 = vmul.f32 0.2, %v1908_v44 }
 0x767   :  { %v1913_v19 = vsel %vm1909_vm14, %v1907_v43, %v1911_v45  ;;  %v1914_v47 = vsel %vm1910_vm15, %v1908_v44, %v1912_v46 }
 0x768   :  { %1916 = vst.msk [vmem:[#allocation4] sm:$0xff] %vm1915_vm13, %v1913_v19  ;;  %1918 = vst.msk [vmem:[#allocation4 + $0x8] sm:$0xff] %vm1915_vm13, %v1914_v47 }
 0x769   :  { %2089 = shalt.err (!%p2086_p4)
}
 0x76a   :  { %s2090_s22 = scalar_lea.hbm %s2403_s8, 256 }
 0x76b   :  { %p2091_p5 = scmp.ne.s32.totalorder %s2403_s8, %s2090_s22  ;;  %p2094_p6 = scmp.lt.u32.totalorder %s2090_s22, %s2403_s8 }
 0x76d   :  { %p2096_p7 = pnand %p2094_p6, %p2091_p5 }
 0x76f   :  { %2099 = shalt.err (!%p2096_p7)
}
 0x770   :  { %s2117_s5 = smov 128   ;;  %s2118_s6 = smov 8  }
 0x771   :  { %1930 = dma.vmem_to_hbm [thread:$0]  %s1925_s19, 256, %s2403_s8, [#allocation5], %s2117_s5, %s2117_s5, %s2118_s6  }
 0x772   :  { %2100 = dma.done.wait [#allocation5], 256  }
 0x773   :  { %2101 = vsyncadd [#allocation5], 4294967040 }
 0x774   :  { %1934 = vsyncpa [#allocation5], 1 }

</bundles_post_ra>
